<compile_context>
chip_gen: v6e
topology: v6e:2x2x1
jax: 0.10.0
libtpu: 0.0.40
codegen_flags: <defaults>
</compile_context>

<pallas_src>
import jax
import jax.numpy as jnp
from jax.experimental import pallas as pl
from jax.experimental.pallas import tpu as pltpu


# --------------------------------------------------------------------------
# Kernel
# --------------------------------------------------------------------------
def dueling_kernel(x_ref, w1_ref, b1_ref, w2_ref, b2_ref, q_ref):
    # x arrives already in bf16 (cast in the wrapper -> half the DMA bytes).
    h = jnp.dot(x_ref[...], w1_ref[...], preferred_element_type=jnp.float32)
    h = jnp.maximum(h + b1_ref[...], 0.0)
    # f32 bias/ReLU keeps the kernel legal on v5e (no bf16 VPU); bf16 cast
    # feeds the second MXU matmul.
    q = jnp.dot(h.astype(jnp.bfloat16), w2_ref[...],
                preferred_element_type=jnp.float32)
    q_ref[...] = (q + b2_ref[...]).astype(q_ref.dtype)


# --------------------------------------------------------------------------
# Parameter folding (runs once per parameter set)
# --------------------------------------------------------------------------
def _pad_axis(a, axis, multiple):
    pad = (-a.shape[axis]) % multiple
    if pad == 0:
        return a
    widths = [(0, 0)] * a.ndim
    widths[axis] = (0, pad)
    return jnp.pad(a, widths)


def fold_params(params, n_actions, n_atoms, lane=128):
    """Fold dueling combine + both streams into one lane-padded 2-matmul MLP.

    Returns (w1_bf16, b1_f32, w2_bf16, b2_f32).
    """
    A, N = n_actions, n_atoms
    AN = A * N
    f32 = jnp.float32

    # Exact combine matrices (mean over the atoms axis, dim=-1, matching the
    # provided PyTorch forward).
    avg = jnp.kron(jnp.eye(A, dtype=f32), jnp.ones((N, N), f32) / float(N))
    tile = jnp.concatenate([jnp.eye(N, dtype=f32)] * A, axis=1)      # (N, AN)
    sub_mean = jnp.eye(AN, dtype=f32) - avg                          # (AN, AN)

    aw2 = params["aw2"] @ sub_mean
    ab2 = params["ab2"] @ sub_mean
    vw2 = params["vw2"] @ tile
    vb2 = params["vb2"] @ tile

    w1 = jnp.concatenate([params["aw1"], params["vw1"]], axis=1)     # (in, 2h)
    b1 = jnp.concatenate([params["ab1"], params["vb1"]], axis=1)     # (1, 2h)
    w2 = jnp.concatenate([aw2, vw2], axis=0)                         # (2h, AN)
    b2 = ab2 + vb2                                                   # (1, AN)

    # Lane-pad only the hidden width (exact: zero hidden columns stay zero
    # through ReLU and meet zero W2 rows).  The output width AN is NOT padded:
    # q is emitted at its true width so there is no zero writeback and no
    # wrapper-side slice copy.
    w1 = _pad_axis(w1, 1, lane)
    b1 = _pad_axis(b1, 1, lane)
    w2 = _pad_axis(w2, 0, lane)

    return (w1.astype(jnp.bfloat16), b1.astype(f32),
            w2.astype(jnp.bfloat16), b2.astype(f32))


# --------------------------------------------------------------------------
# Forward wrapper
# --------------------------------------------------------------------------
_WEIGHT_MODE_CACHE = []  # [] = unprobed; [mode] = known-working pipeline mode


def _weight_spec(shape, mode):
    if mode is None:
        return pl.BlockSpec(shape, lambda i: (0, 0))
    return pl.BlockSpec(shape, lambda i: (0, 0), pipeline_mode=mode)


def _build_call(B, in_dim, AN, TB, w1, b1, w2, b2, weight_mode,
                vmem_limit, cost):
    return pl.pallas_call(
        dueling_kernel,
        out_shape=jax.ShapeDtypeStruct((B, AN), jnp.float32),
        grid_spec=pltpu.PrefetchScalarGridSpec(
            num_scalar_prefetch=0,
            grid=(pl.cdiv(B, TB),),
            in_specs=[
                pl.BlockSpec((TB, in_dim), lambda i: (i, 0)),   # x: batch-tiled
                _weight_spec(w1.shape, weight_mode),            # resident weights
                _weight_spec(b1.shape, weight_mode),
                _weight_spec(w2.shape, weight_mode),
                _weight_spec(b2.shape, weight_mode),
            ],
            out_specs=pl.BlockSpec((TB, AN), lambda i: (i, 0)),
        ),
        compiler_params=pltpu.CompilerParams(
            dimension_semantics=("parallel",),
            vmem_limit_bytes=vmem_limit),
        cost_estimate=cost,
    )


def dueling_forward(x, folded, n_actions, n_atoms, batch_tile=512):
    """x: (B, in_dim) -> q: (B, n_actions, n_atoms) f32."""
    w1, b1, w2, b2 = folded
    B, in_dim = x.shape
    AN = n_actions * n_atoms
    hid = w1.shape[1]

    # bf16 streaming input (in production the torso should emit bf16 directly
    # so this cast fuses away upstream).
    xb = x.astype(jnp.bfloat16)

    # Batch tile: no wrapper-side pad.  Single full-dim block for small B,
    # otherwise a multiple-of-8 tile with a (masked) ragged last grid step.
    if B <= batch_tile:
        TB = B
    else:
        TB = ((min(batch_tile, B) + 7) // 8) * 8

    # VMEM audit: resident weights (x buffer count), double-buffered x/q tiles,
    # and the f32 h intermediate, with headroom.
    weight_bytes = sum(int(a.size) * a.dtype.itemsize for a in (w1, b1, w2, b2))
    io_bytes = 2 * TB * in_dim * 2 + 2 * TB * AN * 4
    h_bytes = TB * hid * 4
    need = 2 * weight_bytes + io_bytes + 2 * h_bytes
    vmem_limit = int(min(100 * 2**20, max(16 * 2**20, 2 * need)))

    cost = pl.CostEstimate(
        flops=2 * B * (in_dim * hid + hid * AN),
        transcendentals=0,
        bytes_accessed=int(B * in_dim * 2 + B * AN * 4 + weight_bytes),
    )

    # Prefer single-buffered resident weights; fall back to default pipelining
    # (and cache the working mode) if the installed JAX rejects Buffered(1).
    if _WEIGHT_MODE_CACHE:
        modes = [_WEIGHT_MODE_CACHE[0]]
    else:
        buffered = getattr(pl, "Buffered", None)
        modes = ([buffered(1)] if buffered is not None else []) + [None]

    q_flat, err = None, None
    for mode in modes:
        try:
            call = _build_call(B, in_dim, AN, TB, w1, b1, w2, b2,
                               mode, vmem_limit, cost)
            q_flat = call(xb, w1, b1, w2, b2)
            if not _WEIGHT_MODE_CACHE:
                jax.block_until_ready(q_flat)      # force compile during probe
                _WEIGHT_MODE_CACHE.append(mode)
            break
        except Exception as e:                     # noqa: BLE001 (probe fallback)
            err, q_flat = e, None
    if q_flat is None:
        raise err

    # (B, AN) -> (B, A, N): contiguous split of the last dim, metadata only.
    return q_flat.reshape(B, n_actions, n_atoms)


# --------------------------------------------------------------------------
# Reference + demo
# --------------------------------------------------------------------------
def make_params(key, in_dim, hidden, n_actions, n_atoms):
    ks = jax.random.split(key, 8)
    s = 0.1
    return {
        "aw1": s * jax.random.normal(ks[0], (in_dim, hidden), jnp.float32),
        "ab1": s * jax.random.normal(ks[1], (1, hidden), jnp.float32),
        "aw2": s * jax.random.normal(ks[2], (hidden, n_actions * n_atoms), jnp.float32),
        "ab2": s * jax.random.normal(ks[3], (1, n_actions * n_atoms), jnp.float32),
        "vw1": s * jax.random.normal(ks[4], (in_dim, hidden), jnp.float32),
        "vb1": s * jax.random.normal(ks[5], (1, hidden), jnp.float32),
        "vw2": s * jax.random.normal(ks[6], (hidden, n_atoms), jnp.float32),
        "vb2": s * jax.random.normal(ks[7], (1, n_atoms), jnp.float32),
    }


def reference_forward(x, params, n_actions, n_atoms):
    """Pure-JAX f32 reference mirroring the PyTorch forward exactly."""
    h_a = jnp.maximum(x @ params["aw1"] + params["ab1"], 0.0)
    adv = (h_a @ params["aw2"] + params["ab2"]).reshape(-1, n_actions, n_atoms)
    h_v = jnp.maximum(x @ params["vw1"] + params["vb1"], 0.0)
    val = (h_v @ params["vw2"] + params["vb2"]).reshape(-1, 1, n_atoms)
    return val + adv - adv.mean(axis=-1, keepdims=True)


if __name__ == "__main__":
    # B=20 with batch_tile=8 -> grid of 3 with a ragged last tile: exercises
    # the no-pad batch path (masked last-tile stores) plus multi-step pipelining.
    B, in_dim, hidden = 20, 64, 32
    n_actions, n_atoms = 4, 8

    key = jax.random.PRNGKey(0)
    kx, kp = jax.random.split(key)
    x = jax.random.normal(kx, (B, in_dim), jnp.float32)
    params = make_params(kp, in_dim, hidden, n_actions, n_atoms)

    folded = fold_params(params, n_actions, n_atoms)
    q = dueling_forward(x, folded, n_actions, n_atoms, batch_tile=8)
    q = jax.block_until_ready(q)

    q_ref = reference_forward(x, params, n_actions, n_atoms)
    assert q.shape == (B, n_actions, n_atoms)
    # bf16 MXU operands vs f32 reference -> loosened tolerance.
    assert jnp.allclose(q, q_ref, atol=5e-2, rtol=5e-2), "mismatch vs reference"

    print("KERNEL_OK")
</pallas_src>

<mosaic_0001>
module attributes {stable_mosaic.version = 11 : i64} {
  func.func @dueling_kernel(%arg0: i32, %arg1: memref<8x64xbf16, #tpu.memory_space<vmem>>, %arg2: memref<64x128xbf16, #tpu.memory_space<vmem>>, %arg3: memref<1x128xf32, #tpu.memory_space<vmem>>, %arg4: memref<128x32xbf16, #tpu.memory_space<vmem>>, %arg5: memref<1x32xf32, #tpu.memory_space<vmem>>, %arg6: memref<8x32xf32, #tpu.memory_space<vmem>>) attributes {dimension_semantics = [#tpu.dimension_semantics<parallel>], iteration_bounds = array<i64: 3>, scalar_prefetch = 0 : i64, scratch_operands = 0 : i64, tpu.core_type = #tpu.core_type<tc>, window_params = [{transform_indices = @transform_0, window_bounds = array<i64: 8, 64>}, {pipeline_mode = #tpu.pipeline_mode<synchronous>, transform_indices = @transform_1, window_bounds = array<i64: 64, 128>}, {pipeline_mode = #tpu.pipeline_mode<synchronous>, transform_indices = @transform_2, window_bounds = array<i64: 1, 128>}, {pipeline_mode = #tpu.pipeline_mode<synchronous>, transform_indices = @transform_3, window_bounds = array<i64: 128, 32>}, {pipeline_mode = #tpu.pipeline_mode<synchronous>, transform_indices = @transform_4, window_bounds = array<i64: 1, 32>}, {transform_indices = @transform_5, window_bounds = array<i64: 8, 32>}]} {
    %c0 = arith.constant 0 : index
    %c0_0 = arith.constant 0 : index
    %0 = vector.load %arg1[%c0, %c0_0] : memref<8x64xbf16, #tpu.memory_space<vmem>>, vector<8x64xbf16>
    %c0_1 = arith.constant 0 : index
    %c0_2 = arith.constant 0 : index
    %1 = vector.load %arg2[%c0_1, %c0_2] : memref<64x128xbf16, #tpu.memory_space<vmem>>, vector<64x128xbf16>
    %cst = arith.constant dense<0.000000e+00> : vector<8x128xf32>
    %2 = tpu.matmul %0, %1, %cst {dimension_numbers = #tpu.dot_dimension_numbers<[1], [0], [0], [1], [0, 0, 1, 1], [], []>} : vector<8x64xbf16>, vector<64x128xbf16>, vector<8x128xf32> -> vector<8x128xf32>
    %c0_3 = arith.constant 0 : index
    %c0_4 = arith.constant 0 : index
    %3 = vector.load %arg3[%c0_3, %c0_4] : memref<1x128xf32, #tpu.memory_space<vmem>>, vector<1x128xf32>
    %4 = vector.broadcast %3 : vector<1x128xf32> to vector<8x128xf32>
    %5 = arith.addf %2, %4 : vector<8x128xf32>
    %cst_5 = arith.constant 0.000000e+00 : f32
    %6 = vector.broadcast %cst_5 : f32 to vector<8x128xf32>
    %7 = arith.maximumf %5, %6 : vector<8x128xf32>
    %8 = arith.truncf %7 : vector<8x128xf32> to vector<8x128xbf16>
    %c0_6 = arith.constant 0 : index
    %c0_7 = arith.constant 0 : index
    %9 = vector.load %arg4[%c0_6, %c0_7] : memref<128x32xbf16, #tpu.memory_space<vmem>>, vector<128x32xbf16>
    %cst_8 = arith.constant dense<0.000000e+00> : vector<8x32xf32>
    %10 = tpu.matmul %8, %9, %cst_8 {dimension_numbers = #tpu.dot_dimension_numbers<[1], [0], [0], [1], [0, 0, 1, 1], [], []>} : vector<8x128xbf16>, vector<128x32xbf16>, vector<8x32xf32> -> vector<8x32xf32>
    %c0_9 = arith.constant 0 : index
    %c0_10 = arith.constant 0 : index
    %11 = vector.load %arg5[%c0_9, %c0_10] : memref<1x32xf32, #tpu.memory_space<vmem>>, vector<1x32xf32>
    %12 = vector.broadcast %11 : vector<1x32xf32> to vector<8x32xf32>
    %13 = arith.addf %10, %12 : vector<8x32xf32>
    %c0_11 = arith.constant 0 : index
    %c0_12 = arith.constant 0 : index
    %14 = vector.load %arg6[%c0_11, %c0_12] : memref<8x32xf32, #tpu.memory_space<vmem>>, vector<8x32xf32>
    tpu.vector_store %arg6[%c0_11, %c0_12], %13 {strides = array<i32>} : memref<8x32xf32, #tpu.memory_space<vmem>>, vector<8x32xf32>,
    return
  }
  func.func @transform_0(%arg0: i32) -> (i32, i32) {
    %c0_i32 = arith.constant 0 : i32
    %c0_i32_0 = arith.constant 0 : i32
    return %arg0, %c0_i32 : i32, i32
  }
  func.func @transform_1(%arg0: i32) -> (i32, i32) {
    %c0_i32 = arith.constant 0 : i32
    %c0_i32_0 = arith.constant 0 : i32
    %c0_i32_1 = arith.constant 0 : i32
    return %c0_i32, %c0_i32_0 : i32, i32
  }
  func.func @transform_2(%arg0: i32) -> (i32, i32) {
    %c0_i32 = arith.constant 0 : i32
    %c0_i32_0 = arith.constant 0 : i32
    %c0_i32_1 = arith.constant 0 : i32
    return %c0_i32, %c0_i32_0 : i32, i32
  }
  func.func @transform_3(%arg0: i32) -> (i32, i32) {
    %c0_i32 = arith.constant 0 : i32
    %c0_i32_0 = arith.constant 0 : i32
    %c0_i32_1 = arith.constant 0 : i32
    return %c0_i32, %c0_i32_0 : i32, i32
  }
  func.func @transform_4(%arg0: i32) -> (i32, i32) {
    %c0_i32 = arith.constant 0 : i32
    %c0_i32_0 = arith.constant 0 : i32
    %c0_i32_1 = arith.constant 0 : i32
    return %c0_i32, %c0_i32_0 : i32, i32
  }
  func.func @transform_5(%arg0: i32) -> (i32, i32) {
    %c0_i32 = arith.constant 0 : i32
    %c0_i32_0 = arith.constant 0 : i32
    return %arg0, %c0_i32 : i32, i32
  }
}

module attributes {stable_mosaic.version = 11 : i64} {
  func.func @dueling_kernel(%arg0: i32, %arg1: memref<8x64xbf16, #tpu.memory_space<vmem>>, %arg2: memref<64x128xbf16, #tpu.memory_space<vmem>>, %arg3: memref<1x128xf32, #tpu.memory_space<vmem>>, %arg4: memref<128x32xbf16, #tpu.memory_space<vmem>>, %arg5: memref<1x32xf32, #tpu.memory_space<vmem>>, %arg6: memref<8x32xf32, #tpu.memory_space<vmem>>) attributes {dimension_semantics = [#tpu.dimension_semantics<parallel>], iteration_bounds = array<i64: 3>, scalar_prefetch = 0 : i64, scratch_operands = 0 : i64, tpu.core_type = #tpu.core_type<tc>, window_params = [{transform_indices = @transform_0, window_bounds = array<i64: 8, 64>}, {pipeline_mode = #tpu.pipeline_mode<synchronous>, transform_indices = @transform_1, window_bounds = array<i64: 64, 128>}, {pipeline_mode = #tpu.pipeline_mode<synchronous>, transform_indices = @transform_2, window_bounds = array<i64: 1, 128>}, {pipeline_mode = #tpu.pipeline_mode<synchronous>, transform_indices = @transform_3, window_bounds = array<i64: 128, 32>}, {pipeline_mode = #tpu.pipeline_mode<synchronous>, transform_indices = @transform_4, window_bounds = array<i64: 1, 32>}, {transform_indices = @transform_5, window_bounds = array<i64: 8, 32>}]} {
    %c0 = arith.constant 0 : index
    %c0_0 = arith.constant 0 : index
    %0 = vector.load %arg1[%c0, %c0_0] : memref<8x64xbf16, #tpu.memory_space<vmem>>, vector<8x64xbf16>
    %c0_1 = arith.constant 0 : index
    %c0_2 = arith.constant 0 : index
    %1 = vector.load %arg2[%c0_1, %c0_2] : memref<64x128xbf16, #tpu.memory_space<vmem>>, vector<64x128xbf16>
    %cst = arith.constant dense<0.000000e+00> : vector<8x128xf32>
    %2 = tpu.matmul %0, %1, %cst {dimension_numbers = #tpu.dot_dimension_numbers<[1], [0], [0], [1], [0, 0, 1, 1], [], []>} : vector<8x64xbf16>, vector<64x128xbf16>, vector<8x128xf32> -> vector<8x128xf32>
    %c0_3 = arith.constant 0 : index
    %c0_4 = arith.constant 0 : index
    %3 = vector.load %arg3[%c0_3, %c0_4] : memref<1x128xf32, #tpu.memory_space<vmem>>, vector<1x128xf32>
    %4 = vector.broadcast %3 : vector<1x128xf32> to vector<8x128xf32>
    %5 = arith.addf %2, %4 : vector<8x128xf32>
    %cst_5 = arith.constant 0.000000e+00 : f32
    %6 = vector.broadcast %cst_5 : f32 to vector<8x128xf32>
    %7 = arith.maximumf %5, %6 : vector<8x128xf32>
    %8 = arith.truncf %7 : vector<8x128xf32> to vector<8x128xbf16>
    %c0_6 = arith.constant 0 : index
    %c0_7 = arith.constant 0 : index
    %9 = vector.load %arg4[%c0_6, %c0_7] : memref<128x32xbf16, #tpu.memory_space<vmem>>, vector<128x32xbf16>
    %cst_8 = arith.constant dense<0.000000e+00> : vector<8x32xf32>
    %10 = tpu.matmul %8, %9, %cst_8 {dimension_numbers = #tpu.dot_dimension_numbers<[1], [0], [0], [1], [0, 0, 1, 1], [], []>} : vector<8x128xbf16>, vector<128x32xbf16>, vector<8x32xf32> -> vector<8x32xf32>
    %c0_9 = arith.constant 0 : index
    %c0_10 = arith.constant 0 : index
    %11 = vector.load %arg5[%c0_9, %c0_10] : memref<1x32xf32, #tpu.memory_space<vmem>>, vector<1x32xf32>
    %12 = vector.broadcast %11 : vector<1x32xf32> to vector<8x32xf32>
    %13 = arith.addf %10, %12 : vector<8x32xf32>
    %c0_11 = arith.constant 0 : index
    %c0_12 = arith.constant 0 : index
    %14 = vector.load %arg6[%c0_11, %c0_12] : memref<8x32xf32, #tpu.memory_space<vmem>>, vector<8x32xf32>
    tpu.vector_store %arg6[%c0_11, %c0_12], %13 {strides = array<i32>} : memref<8x32xf32, #tpu.memory_space<vmem>>, vector<8x32xf32>,
    return
  }
  func.func @transform_0(%arg0: i32) -> (i32, i32) {
    %c0_i32 = arith.constant 0 : i32
    %c0_i32_0 = arith.constant 0 : i32
    return %arg0, %c0_i32 : i32, i32
  }
  func.func @transform_1(%arg0: i32) -> (i32, i32) {
    %c0_i32 = arith.constant 0 : i32
    %c0_i32_0 = arith.constant 0 : i32
    %c0_i32_1 = arith.constant 0 : i32
    return %c0_i32, %c0_i32_0 : i32, i32
  }
  func.func @transform_2(%arg0: i32) -> (i32, i32) {
    %c0_i32 = arith.constant 0 : i32
    %c0_i32_0 = arith.constant 0 : i32
    %c0_i32_1 = arith.constant 0 : i32
    return %c0_i32, %c0_i32_0 : i32, i32
  }
  func.func @transform_3(%arg0: i32) -> (i32, i32) {
    %c0_i32 = arith.constant 0 : i32
    %c0_i32_0 = arith.constant 0 : i32
    %c0_i32_1 = arith.constant 0 : i32
    return %c0_i32, %c0_i32_0 : i32, i32
  }
  func.func @transform_4(%arg0: i32) -> (i32, i32) {
    %c0_i32 = arith.constant 0 : i32
    %c0_i32_0 = arith.constant 0 : i32
    %c0_i32_1 = arith.constant 0 : i32
    return %c0_i32, %c0_i32_0 : i32, i32
  }
  func.func @transform_5(%arg0: i32) -> (i32, i32) {
    %c0_i32 = arith.constant 0 : i32
    %c0_i32_0 = arith.constant 0 : i32
    return %arg0, %c0_i32 : i32, i32
  }
}

</mosaic_0001>

<bundles_post_ra>
// kernel: tpu_custom_call.1
= control target key start
LH: loop header
LB: loop body
LE: loop exit
PB: predicated region body
PF: predicated region fallthrough
CT: control target
= control target key end

     0   :  { %10 = vsyncpa [#allocation3], 0  ;;  %s853_s0 = inlined_call_operand.vmem [shape: bf16[20,64], index: 0, kind: input, shape index: {}]   ;;  %s854_s1 = inlined_call_operand.vmem [shape: bf16[64,128], index: 1, kind: input, shape index: {}]   ;;  %s855_s2 = inlined_call_operand.vmem [shape: f32[1,128], index: 2, kind: input, shape index: {}]   ;;  %s856_s3 = inlined_call_operand.vmem [shape: bf16[128,32], index: 3, kind: input, shape index: {}]   ;;  %s857_s4 = inlined_call_operand.vmem [shape: f32[1,32], index: 4, kind: input, shape index: {}]   ;;  %s858_s5 = inlined_call_operand.hbm [shape: f32[20,32], index: 5, kind: output, shape index: {}]  }
   0x1   :  { %12 = vsyncpa [#allocation3 + $0x1], 0  ;;  %s712_s18 = smov 0   ;;  %s714_s19 = smov 0  }
   0x2   :  { %s716_s20 = smov 0   ;;  %s718_s21 = smov 0  }
   0x3 LB: > { %s733_s22 = sadd.s32 4294967295, %s677_s21   ;;  %s493_s23 = sadd.s32 4294967294, %s677_s21   ;;  %s677_s21 = sphi %s718_s21, %s864_s21   ;;  %s673_s20 = sphi %s716_s20, %s863_s20   ;;  %s669_s19 = sphi %s714_s19, %s862_s19   ;;  %s665_s18 = sphi %s712_s18, %s861_s18  }
   0x4   : > { %s737_s24 = sadd.s32 1, %s677_s21   ;;  %s135_s25 = sadd.s32 1, %s673_s20 }
   0x5   : > { %s132_s26 = ssub.s32 %s677_s21, %s737_s24  ;;  %p145_p0 = scmp.ne.s32.totalorder %s673_s20, %s669_s19 }
   0x6   : > { %p133_p1 = scmp.eq.s32.totalorder %s132_s26, 0  ;;  %p146_p2 = scmp.eq.s32.totalorder %s733_s22, 2 }
   0x7   : > { %p151_p3 = scmp.ne.s32.totalorder %s669_s19, %s665_s18  ;;  %p152_p4 = scmp.eq.s32.totalorder %s493_s23, 2 }
   0x8   : > { %s748_s27 = scalar_select %p133_p1, %s673_s20, %s135_s25  }
   0x9   : > { %p750_p5 = por %p146_p2, %p145_p0  ;;  %p754_p6 = por %p152_p4, %p151_p3 }
   0xa   : > { %p496_p7 = scmp.ge.s32.totalorder %s677_s21, 1  ;;  %p189_p8 = scmp.lt.s32.totalorder %s677_s21, 4 }
   0xc   : > { %p190_p9 = pnand %p496_p7, %p189_p8 }
   0xd   : > { %p216_p10 = scmp.lt.s32.totalorder (!%p190_p9), %s733_s22, 2  ;;  %s213_s26 = sand.u32 (!%p190_p9), 1, %s669_s19  }
   0xe   : > { %193 = sbr.rel (%p190_p9) target bundleno = 444 (0x1bc), region = 40  ;;  %s497_s30 = sshll.u32 (!%p190_p9), %s213_s26, 3 }
   0xf   : > { %s515_s8 = sshll.u32 (!%p190_p9), %s733_s22, 7  ;;  %s421_s14 = scalar_lea.sflag (!%p190_p9), [#allocation3], %s213_s26 }
  0x10   : > { %s812_s13 = scalar_lea.hbm (!%p190_p9), %s858_s5, %s515_s8  ;;  %s681_s15 = smov (!%p190_p9), [#allocation2]  }
  0x13   : > { %v605_v0 = vld [vmem:[%s854_s1 + $0x18] sm:$0xff]   ;;  %v679_v1 = vmov 0.0   ;;  %v606_v2 = vld [vmem:[%s854_s1 + $0x10] sm:$0xff]   ;;  %vm680_vm0 = vmmov 0   ;;  %s217_s9 = scalar_select %p216_p10, %s733_s22, 2  ;;  %v607_v4 = vld [vmem:[%s854_s1 + $0x8] sm:$0xff]  }
  0x14   : > { %532 = vmatprep.subr.bf16.mxu0 %v679_v1  ;;  %544 = vmatprep.subr.bf16.mxu1 %v679_v1  ;;  %v609_v3 = vld [vmem:[%s856_s3 + $0x38] sm:$0xff]   ;;  %v610_v5 = vld [vmem:[%s856_s3 + $0x30] sm:$0xff]   ;;  %v608_v6 = vld [vmem:[%s854_s1] sm:$0xff]   ;;  %vm261_vm1 = vcmask 523264   ;;  %vm418_vm2 = vcmask 261120  }
  0x15   : > { %533 = vmatpush3.bf16.msra.mxu0 %v605_v0  ;;  %540 = vmatprep.mubr.msk.bf16.mxu0 %vm680_vm0, %v679_v1  ;;  %s498_s16 = sshll.u32 %s217_s9, 2  ;;  %v611_v7 = vld [vmem:[%s856_s3 + $0x28] sm:$0xff]   ;;  %v612_v9 = vld [vmem:[%s856_s3 + $0x20] sm:$0xff]   ;;  %v613_v10 = vld [vmem:[%s856_s3 + $0x18] sm:$0xff]   ;;  %s215_s9 = scalar_lea.vmem [#allocation2], %s497_s30 }
  0x16   : > { %534 = vmatprep.subr.bf16.mxu0 %v679_v1  ;;  %560 = vmatprep.mubr.msk.bf16.mxu1 %vm680_vm0, %v679_v1  ;;  %s219_s7 = scalar_lea.vmem %s853_s0, %s498_s16  ;;  %v614_v11 = vld [vmem:[%s856_s3 + $0x10] sm:$0xff]   ;;  %v615_v12 = vld [vmem:[%s856_s3 + $0x8] sm:$0xff]   ;;  %v616_v13 = vld [vmem:[%s856_s3] sm:$0xff]   ;;  %s434_s10 = sshll.u32 %s215_s9, 4  ;;  %s814_s10 = int_to_ptr.vmem [resolvable:$true] %s434_s10 }
  0x17   : > { %545 = vmatpush3.bf16.msra.mxu1 %v609_v3  ;;  %v221_v8 = vld [vmem:[%s219_s7] sm:$0xf]  ;;  %s617_s22 = scalar_lea.vmem %s814_s10, 128  ;;  %s621_s16 = sshll.u32 %s681_s15, 4  ;;  %s622_s16 = int_to_ptr.vmem [resolvable:$false] %s621_s16 }
  0x18   : > { %546 = vmatprep.subr.bf16.mxu1 %v679_v1  ;;  %v499_v14 = vld [vmem:[%s855_s2] ss:$0 sm:$0xff]  ;;  %p618_p11 = scmp.ne.s32.totalorder %s814_s10, %s617_s22  ;;  %s623_s17 = scalar_lea.vmem %s622_s16, 256 }
  0x19   : > { %535 = vmatpush3.bf16.msra.mxu0 %v606_v2  ;;  %v505_v22 = vld [vmem:[%s857_s4] ss:$0 sm:$0xff]  ;;  %p624_p0 = scmp.lt.s32.totalorder %s814_s10, %s622_s16  ;;  %p625_p1 = scmp.lt.s32.totalorder %s623_s17, %s617_s22 }
  0x1a   : > { %536 = vmatprep.subr.bf16.mxu0 %v679_v1  ;;  %p619_p12 = pnand %p618_p11, %p750_p5 }
  0x1b   : > { %547 = vmatpush3.bf16.msra.mxu1 %v610_v5  ;;  %p626_p2 = por %p625_p1, %p624_p0 }
  0x1c   : > { %548 = vmatprep.subr.bf16.mxu1 %v679_v1  ;;  %p620_p13 = pneg %p619_p12 }
  0x1d   : > { %537 = vmatpush3.bf16.msra.mxu0 %v607_v4 }
  0x1e   : > { %538 = vmatprep.subr.bf16.mxu0 %v679_v1  ;;  %p627_p3 = pnand %p626_p2, %p620_p13 }
  0x1f   : > { %549 = vmatpush3.bf16.msra.mxu1 %v611_v7 }
  0x20   : > { %550 = vmatprep.subr.bf16.mxu1 %v679_v1 }
  0x21   : > { %539 = vmatpush3.bf16.msra.mxu0 %v608_v6 }
  0x23   : > { %551 = vmatpush3.bf16.msra.mxu1 %v612_v9 }
  0x24   : > { %541 = vmatmul.mubr.msk.bf16.vlgmr.msra.gmra.mxu0 %vm261_vm1, %v221_v8  ;;  %552 = vmatprep.subr.bf16.mxu1 %v679_v1 }
  0x27   : > { %553 = vmatpush3.bf16.msra.mxu1 %v613_v10 }
  0x28   : > { %554 = vmatprep.subr.bf16.mxu1 %v679_v1 }
  0x2b   : > { %555 = vmatpush3.bf16.msra.mxu1 %v614_v11 }
  0x2c   : > { %556 = vmatprep.subr.bf16.mxu1 %v679_v1 }
  0x2f   : > { %557 = vmatpush3.bf16.msra.mxu1 %v615_v12 }
  0x30   : > { %558 = vmatprep.subr.bf16.mxu1 %v679_v1 }
  0x33   : > { %559 = vmatpush3.bf16.msra.mxu1 %v616_v13 }
  0xe4   : > { %v299_v15 = vpop.f32.mrf.mxu0 }
  0xe5   : > { %v300_v16 = vadd.f32 %v499_v14, %v299_v15 }
  0xe6   : > { %v542_v17 = vpop.f32.mrf.mxu0 }
  0xe7   : > { %v305_v18 = vmax.f32 %v300_v16, 0.0 }
  0xe8   : > { %v302_v19 = vpop.f32.mrf.mxu0 }
  0xe9   : > { %v306_v20 = vpack.c.bf16 %v305_v18, %v305_v18 }
  0xea   : > { %v543_v21 = vpop.f32.mrf.mxu0 }
  0xeb   : > { %561 = vmatmul.mubr.bf16.vlgmr.msra.gmra.mxu1 %v306_v20 }
 0x1ab   : > { %v412_v23 = vpop.f32.mrf.mxu1 }
 0x1ac   : > { %v413_v24 = vadd.f32 %v505_v22, %v412_v23 }
 0x1ad   : > { %v562_v25 = vpop.f32.mrf.mxu1 }
 0x1ae   : > { %419 = vst.msk [vmem:[%s215_s9] sm:$0xff] %vm418_vm2, %v413_v24 }
 0x1af   : > { %v415_v26 = vpop.f32.mrf.mxu1 }
 0x1b0   : > { %630 = shalt.err (!%p627_p3)
}
 0x1b1   : > { %s631_s23 = scalar_lea.hbm %s812_s13, 128  ;;  %s635_s30 = scalar_lea.hbm %s858_s5, 384 }
 0x1b2   : > { %p632_p4 = scmp.ne.s32.totalorder %s812_s13, %s631_s23  ;;  %p636_p9 = scmp.lt.s32.totalorder %s812_s13, %s858_s5 }
 0x1b3   : > { %p637_p10 = scmp.lt.s32.totalorder %s635_s30, %s631_s23 }
 0x1b4   : > { %p633_p7 = pnand %p632_p4, %p750_p5 }
 0x1b5   : > { %p638_p11 = por %p637_p10, %p636_p9 }
 0x1b6   : > { %p634_p8 = pneg %p633_p7 }
 0x1b8   : > { %p639_p12 = pnand %p638_p11, %p634_p8 }
 0x1ba   : > { %642 = shalt.err (!%p639_p12)
}
 0x1bb   : > { %564 = dma.vmem_to_hbm [thread:$0]  (%p750_p5), %s814_s10, 128, %s812_s13, %s421_s14   ;;  %v563_v27 = vpop.f32.mrf.mxu1 }
 0x1bc PF: > { %p570_p13 = scmp.ge.s32.totalorder %s677_s21, 2  ;;  %s446_s8 = sand.u32 1, %s665_s18  }
 0x1bd   : > { %s447_s9 = scalar_lea.sflag [#allocation3], %s446_s8 }
 0x1be   : > { %p567_p0 = pnand %p570_p13, %p754_p6 }
 0x1c0   : > { %p568_p1 = pneg %p567_p0 }
 0x1c2   : > { %660 = dma.done.wait (%p568_p1), %s447_s9, 128  }
 0x1c3   : > { %662 = vsyncadd (%p568_p1), %s447_s9, 4294967168  ;;  %p15_p2 = scmp.ge.s32.totalorder %s737_s24, 5   ;;  %s861_s18 = smov %s669_s19 }
 0x1c4   : > { %s862_s19 = smov %s673_s20  ;;  %s863_s20 = smov %s748_s27 }
 0x1c5   : > { %s864_s21 = smov %s737_s24  ;;  %17 = sbr.rel (!%p15_p2) target bundleno = 3 (0x3), region = 75 }
 0x1ca   :  { %452 = vsyncpa [#allocation3], 1 }
 0x1cb   :  { %454 = vsyncpa [#allocation3 + $0x1], 1 }

// kernel: tpu_custom_call.1
= control target key start
LH: loop header
LB: loop body
LE: loop exit
PB: predicated region body
PF: predicated region fallthrough
CT: control target
= control target key end

     0   :  { %10 = vsyncpa [#allocation3], 0  ;;  %s853_s0 = inlined_call_operand.vmem [shape: bf16[20,64], index: 0, kind: input, shape index: {}]   ;;  %s854_s1 = inlined_call_operand.vmem [shape: bf16[64,128], index: 1, kind: input, shape index: {}]   ;;  %s855_s2 = inlined_call_operand.vmem [shape: f32[1,128], index: 2, kind: input, shape index: {}]   ;;  %s856_s3 = inlined_call_operand.vmem [shape: bf16[128,32], index: 3, kind: input, shape index: {}]   ;;  %s857_s4 = inlined_call_operand.vmem [shape: f32[1,32], index: 4, kind: input, shape index: {}]   ;;  %s858_s5 = inlined_call_operand.hbm [shape: f32[20,32], index: 5, kind: output, shape index: {}]  }
   0x1   :  { %12 = vsyncpa [#allocation3 + $0x1], 0  ;;  %s712_s18 = smov 0   ;;  %s714_s19 = smov 0  }
   0x2   :  { %s716_s20 = smov 0   ;;  %s718_s21 = smov 0  }
   0x3 LB: > { %s733_s22 = sadd.s32 4294967295, %s677_s21   ;;  %s493_s23 = sadd.s32 4294967294, %s677_s21   ;;  %s677_s21 = sphi %s718_s21, %s864_s21   ;;  %s673_s20 = sphi %s716_s20, %s863_s20   ;;  %s669_s19 = sphi %s714_s19, %s862_s19   ;;  %s665_s18 = sphi %s712_s18, %s861_s18  }
   0x4   : > { %s737_s24 = sadd.s32 1, %s677_s21   ;;  %s135_s25 = sadd.s32 1, %s673_s20 }
   0x5   : > { %s132_s26 = ssub.s32 %s677_s21, %s737_s24  ;;  %p145_p0 = scmp.ne.s32.totalorder %s673_s20, %s669_s19 }
   0x6   : > { %p133_p1 = scmp.eq.s32.totalorder %s132_s26, 0  ;;  %p146_p2 = scmp.eq.s32.totalorder %s733_s22, 2 }
   0x7   : > { %p151_p3 = scmp.ne.s32.totalorder %s669_s19, %s665_s18  ;;  %p152_p4 = scmp.eq.s32.totalorder %s493_s23, 2 }
   0x8   : > { %s748_s27 = scalar_select %p133_p1, %s673_s20, %s135_s25  }
   0x9   : > { %p750_p5 = por %p146_p2, %p145_p0  ;;  %p754_p6 = por %p152_p4, %p151_p3 }
   0xa   : > { %p496_p7 = scmp.ge.s32.totalorder %s677_s21, 1  ;;  %p189_p8 = scmp.lt.s32.totalorder %s677_s21, 4 }
   0xc   : > { %p190_p9 = pnand %p496_p7, %p189_p8 }
   0xd   : > { %p216_p10 = scmp.lt.s32.totalorder (!%p190_p9), %s733_s22, 2  ;;  %s213_s26 = sand.u32 (!%p190_p9), 1, %s669_s19  }
   0xe   : > { %193 = sbr.rel (%p190_p9) target bundleno = 444 (0x1bc), region = 40  ;;  %s497_s30 = sshll.u32 (!%p190_p9), %s213_s26, 3 }
   0xf   : > { %s515_s8 = sshll.u32 (!%p190_p9), %s733_s22, 7  ;;  %s421_s14 = scalar_lea.sflag (!%p190_p9), [#allocation3], %s213_s26 }
  0x10   : > { %s812_s13 = scalar_lea.hbm (!%p190_p9), %s858_s5, %s515_s8  ;;  %s681_s15 = smov (!%p190_p9), [#allocation2]  }
  0x13   : > { %v605_v0 = vld [vmem:[%s854_s1 + $0x18] sm:$0xff]   ;;  %v679_v1 = vmov 0.0   ;;  %v606_v2 = vld [vmem:[%s854_s1 + $0x10] sm:$0xff]   ;;  %vm680_vm0 = vmmov 0   ;;  %s217_s9 = scalar_select %p216_p10, %s733_s22, 2  ;;  %v607_v4 = vld [vmem:[%s854_s1 + $0x8] sm:$0xff]  }
  0x14   : > { %532 = vmatprep.subr.bf16.mxu0 %v679_v1  ;;  %544 = vmatprep.subr.bf16.mxu1 %v679_v1  ;;  %v609_v3 = vld [vmem:[%s856_s3 + $0x38] sm:$0xff]   ;;  %v610_v5 = vld [vmem:[%s856_s3 + $0x30] sm:$0xff]   ;;  %v608_v6 = vld [vmem:[%s854_s1] sm:$0xff]   ;;  %vm261_vm1 = vcmask 523264   ;;  %vm418_vm2 = vcmask 261120  }
  0x15   : > { %533 = vmatpush3.bf16.msra.mxu0 %v605_v0  ;;  %540 = vmatprep.mubr.msk.bf16.mxu0 %vm680_vm0, %v679_v1  ;;  %s498_s16 = sshll.u32 %s217_s9, 2  ;;  %v611_v7 = vld [vmem:[%s856_s3 + $0x28] sm:$0xff]   ;;  %v612_v9 = vld [vmem:[%s856_s3 + $0x20] sm:$0xff]   ;;  %v613_v10 = vld [vmem:[%s856_s3 + $0x18] sm:$0xff]   ;;  %s215_s9 = scalar_lea.vmem [#allocation2], %s497_s30 }
  0x16   : > { %534 = vmatprep.subr.bf16.mxu0 %v679_v1  ;;  %560 = vmatprep.mubr.msk.bf16.mxu1 %vm680_vm0, %v679_v1  ;;  %s219_s7 = scalar_lea.vmem %s853_s0, %s498_s16  ;;  %v614_v11 = vld [vmem:[%s856_s3 + $0x10] sm:$0xff]   ;;  %v615_v12 = vld [vmem:[%s856_s3 + $0x8] sm:$0xff]   ;;  %v616_v13 = vld [vmem:[%s856_s3] sm:$0xff]   ;;  %s434_s10 = sshll.u32 %s215_s9, 4  ;;  %s814_s10 = int_to_ptr.vmem [resolvable:$true] %s434_s10 }
  0x17   : > { %545 = vmatpush3.bf16.msra.mxu1 %v609_v3  ;;  %v221_v8 = vld [vmem:[%s219_s7] sm:$0xf]  ;;  %s617_s22 = scalar_lea.vmem %s814_s10, 128  ;;  %s621_s16 = sshll.u32 %s681_s15, 4  ;;  %s622_s16 = int_to_ptr.vmem [resolvable:$false] %s621_s16 }
  0x18   : > { %546 = vmatprep.subr.bf16.mxu1 %v679_v1  ;;  %v499_v14 = vld [vmem:[%s855_s2] ss:$0 sm:$0xff]  ;;  %p618_p11 = scmp.ne.s32.totalorder %s814_s10, %s617_s22  ;;  %s623_s17 = scalar_lea.vmem %s622_s16, 256 }
  0x19   : > { %535 = vmatpush3.bf16.msra.mxu0 %v606_v2  ;;  %v505_v22 = vld [vmem:[%s857_s4] ss:$0 sm:$0xff]  ;;  %p624_p0 = scmp.lt.s32.totalorder %s814_s10, %s622_s16  ;;  %p625_p1 = scmp.lt.s32.totalorder %s623_s17, %s617_s22 }
  0x1a   : > { %536 = vmatprep.subr.bf16.mxu0 %v679_v1  ;;  %p619_p12 = pnand %p618_p11, %p750_p5 }
  0x1b   : > { %547 = vmatpush3.bf16.msra.mxu1 %v610_v5  ;;  %p626_p2 = por %p625_p1, %p624_p0 }
  0x1c   : > { %548 = vmatprep.subr.bf16.mxu1 %v679_v1  ;;  %p620_p13 = pneg %p619_p12 }
  0x1d   : > { %537 = vmatpush3.bf16.msra.mxu0 %v607_v4 }
  0x1e   : > { %538 = vmatprep.subr.bf16.mxu0 %v679_v1  ;;  %p627_p3 = pnand %p626_p2, %p620_p13 }
  0x1f   : > { %549 = vmatpush3.bf16.msra.mxu1 %v611_v7 }
  0x20   : > { %550 = vmatprep.subr.bf16.mxu1 %v679_v1 }
  0x21   : > { %539 = vmatpush3.bf16.msra.mxu0 %v608_v6 }
  0x23   : > { %551 = vmatpush3.bf16.msra.mxu1 %v612_v9 }
  0x24   : > { %541 = vmatmul.mubr.msk.bf16.vlgmr.msra.gmra.mxu0 %vm261_vm1, %v221_v8  ;;  %552 = vmatprep.subr.bf16.mxu1 %v679_v1 }
  0x27   : > { %553 = vmatpush3.bf16.msra.mxu1 %v613_v10 }
  0x28   : > { %554 = vmatprep.subr.bf16.mxu1 %v679_v1 }
  0x2b   : > { %555 = vmatpush3.bf16.msra.mxu1 %v614_v11 }
  0x2c   : > { %556 = vmatprep.subr.bf16.mxu1 %v679_v1 }
  0x2f   : > { %557 = vmatpush3.bf16.msra.mxu1 %v615_v12 }
  0x30   : > { %558 = vmatprep.subr.bf16.mxu1 %v679_v1 }
  0x33   : > { %559 = vmatpush3.bf16.msra.mxu1 %v616_v13 }
  0xe4   : > { %v299_v15 = vpop.f32.mrf.mxu0 }
  0xe5   : > { %v300_v16 = vadd.f32 %v499_v14, %v299_v15 }
  0xe6   : > { %v542_v17 = vpop.f32.mrf.mxu0 }
  0xe7   : > { %v305_v18 = vmax.f32 %v300_v16, 0.0 }
  0xe8   : > { %v302_v19 = vpop.f32.mrf.mxu0 }
  0xe9   : > { %v306_v20 = vpack.c.bf16 %v305_v18, %v305_v18 }
  0xea   : > { %v543_v21 = vpop.f32.mrf.mxu0 }
  0xeb   : > { %561 = vmatmul.mubr.bf16.vlgmr.msra.gmra.mxu1 %v306_v20 }
 0x1ab   : > { %v412_v23 = vpop.f32.mrf.mxu1 }
 0x1ac   : > { %v413_v24 = vadd.f32 %v505_v22, %v412_v23 }
 0x1ad   : > { %v562_v25 = vpop.f32.mrf.mxu1 }
 0x1ae   : > { %419 = vst.msk [vmem:[%s215_s9] sm:$0xff] %vm418_vm2, %v413_v24 }
 0x1af   : > { %v415_v26 = vpop.f32.mrf.mxu1 }
 0x1b0   : > { %630 = shalt.err (!%p627_p3)
}
 0x1b1   : > { %s631_s23 = scalar_lea.hbm %s812_s13, 128  ;;  %s635_s30 = scalar_lea.hbm %s858_s5, 384 }
 0x1b2   : > { %p632_p4 = scmp.ne.s32.totalorder %s812_s13, %s631_s23  ;;  %p636_p9 = scmp.lt.s32.totalorder %s812_s13, %s858_s5 }
 0x1b3   : > { %p637_p10 = scmp.lt.s32.totalorder %s635_s30, %s631_s23 }
 0x1b4   : > { %p633_p7 = pnand %p632_p4, %p750_p5 }
 0x1b5   : > { %p638_p11 = por %p637_p10, %p636_p9 }
 0x1b6   : > { %p634_p8 = pneg %p633_p7 }
 0x1b8   : > { %p639_p12 = pnand %p638_p11, %p634_p8 }
 0x1ba   : > { %642 = shalt.err (!%p639_p12)
}
 0x1bb   : > { %564 = dma.vmem_to_hbm [thread:$0]  (%p750_p5), %s814_s10, 128, %s812_s13, %s421_s14   ;;  %v563_v27 = vpop.f32.mrf.mxu1 }
 0x1bc PF: > { %p570_p13 = scmp.ge.s32.totalorder %s677_s21, 2  ;;  %s446_s8 = sand.u32 1, %s665_s18  }
 0x1bd   : > { %s447_s9 = scalar_lea.sflag [#allocation3], %s446_s8 }
 0x1be   : > { %p567_p0 = pnand %p570_p13, %p754_p6 }
 0x1c0   : > { %p568_p1 = pneg %p567_p0 }
 0x1c2   : > { %660 = dma.done.wait (%p568_p1), %s447_s9, 128  }
 0x1c3   : > { %662 = vsyncadd (%p568_p1), %s447_s9, 4294967168  ;;  %p15_p2 = scmp.ge.s32.totalorder %s737_s24, 5   ;;  %s861_s18 = smov %s669_s19 }
 0x1c4   : > { %s862_s19 = smov %s673_s20  ;;  %s863_s20 = smov %s748_s27 }
 0x1c5   : > { %s864_s21 = smov %s737_s24  ;;  %17 = sbr.rel (!%p15_p2) target bundleno = 3 (0x3), region = 75 }
 0x1ca   :  { %452 = vsyncpa [#allocation3], 1 }
 0x1cb   :  { %454 = vsyncpa [#allocation3 + $0x1], 1 }

</bundles_post_ra>
